<compile_context>
chip_gen: v7x
topology: tpu7x:2x2x1
jax: 0.10.0
libtpu: 0.0.40
codegen_flags: <defaults>
</compile_context>

<pallas_src>
import functools

import jax
import jax.numpy as jnp
from jax import lax
from jax.experimental import pallas as pl
from jax.experimental.pallas import tpu as pltpu


def _interp_kernel(pa_ref, feat_ref, out_ref, acc_ref, *, W, TK, matmul_dtype):
    """One (b, c, n, k) grid step.

    pa_ref:   (1, TN, 2)  f32  scaled+clamped anchors (x, y) for this N block
    feat_ref: (1, CT, TK)      columns [k*TK, (k+1)*TK) of the HW-flattened NCHW map
    out_ref:  (1, CT, TN)      written once, on the last HW tile (lane-dense in TN)
    acc_ref:  (CT, TN)    f32  VMEM accumulator over the HW reduction axis
    """
    k = pl.program_id(3)

    @pl.when(k == 0)
    def _():
        acc_ref[...] = jnp.zeros_like(acc_ref)

    pa = pa_ref[0]                       # (TN, 2)
    x = pa[:, 0:1]                       # (TN, 1) column
    y = pa[:, 1:2]                       # (TN, 1) column

    # Flat coordinates of this HW tile as (1, TK) rows: i = cy * W + cx.
    # f32 iota / arithmetic is exact for HW < 2**24 (asserted in the wrapper); the
    # where-correction removes the off-by-one the rounded division can produce near
    # cell boundaries, making cy/cx exactly the integer div/mod result.
    w_f = jnp.float32(W)
    jf = (lax.broadcasted_iota(jnp.int32, (1, TK), 1) + k * TK).astype(jnp.float32)
    cy = jnp.floor(jf / w_f)                                   # (1, TK)
    r = jf - cy * w_f
    cy = jnp.where(r < 0.0, cy - 1.0, jnp.where(r >= w_f, cy + 1.0, cy))
    cx = jf - cy * w_f                                         # (1, TK)

    # Separable "tent" bilinear weights -- algebraically identical to the torch
    # lt/rt/lb/rb two-step lerp (coincident corners included, since clamping keeps
    # x, y inside [0, H-1]).  Weight math stays in f32 (v5e has no bf16 VPU).
    wx = jnp.maximum(0.0, 1.0 - jnp.abs(cx - x))               # (TN, TK)
    wy = jnp.maximum(0.0, 1.0 - jnp.abs(cy - y))               # (TN, TK)
    w = (wx * wy).astype(matmul_dtype)                         # (TN, TK)

    feat = feat_ref[0].astype(matmul_dtype)                    # (CT, TK)

    # (CT, TK) x (TN, TK) contracted on TK -> (CT, TN): MXU matmul, f32 accumulation,
    # lane-dense output tile (TN is a multiple of 128).
    acc_ref[...] += lax.dot_general(
        feat, w, (((1,), (1,)), ((), ())),
        preferred_element_type=jnp.float32)

    @pl.when(k == pl.num_programs(3) - 1)
    def _():
        out_ref[0] = acc_ref[...].astype(out_ref.dtype)


def interpolation_layer(feature_maps, init_potential_anchor, *,
                        matmul_dtype=None,
                        vmem_limit_bytes=48 * 1024 * 1024):
    """feature_maps: (B, C, H, W); init_potential_anchor: (B, N, 2) -> (B, N, C)."""
    B, C, H, W = feature_maps.shape
    # The torch reference indexes with y*H + x and clamps both coords by H.
    assert H == W, "interpolation_layer assumes square feature maps (torch y*H + x indexing)"
    HW = H * W
    assert HW < (1 << 24), "flat-index math requires H*W < 2**24"
    N = init_potential_anchor.shape[1]

    if matmul_dtype is None:
        matmul_dtype = (feature_maps.dtype
                        if feature_maps.dtype in (jnp.bfloat16, jnp.float32)
                        else jnp.float32)
    out_dtype = feature_maps.dtype

    # Keep NCHW and the native dtype; only flatten the spatial dims (free reshape,
    # no extra HBM copy / no f32 upcast of the big tensor).
    feat = feature_maps.reshape(B, C, HW)

    # Anchors: scale + clamp the tiny tensor in the wrapper, pad N to a lane
    # multiple (padded (0,0) anchors compute valid rows that are sliced off below).
    pa = jnp.clip(init_potential_anchor.astype(jnp.float32) * H, 0.0, float(H - 1))
    n_pad = max(128, -(-N // 128) * 128)
    if n_pad != N:
        pa = jnp.pad(pa, ((0, 0), (0, n_pad - N), (0, 0)))

    # N block: keep all anchors resident (=> feat read from HBM exactly once).
    # Only for very large N fall back to 128-multiple tiles (accepting feat re-reads).
    if n_pad <= 2048:
        n_block = n_pad
    else:
        n_block = next(c for c in (2048, 1024, 512, 256, 128) if n_pad % c == 0)
    n_blocks = n_pad // n_block

    # C split: only to guarantee a parallel grid extent >= 2 (v7x megacore) when the
    # B / N axes do not already provide one.
    c_tile = C
    if B * n_blocks == 1 and C >= 256 and C % 128 == 0:
        c_tile = 128
    c_blocks = C // c_tile

    # HW tile: largest candidate that divides HW and keeps the working set under
    # ~half the scoped VMEM limit.  Falls back to the full extent when HW is not a
    # multiple of 128 (allowed by the BlockSpec full-dim rule).
    feat_isz = jnp.dtype(feature_maps.dtype).itemsize
    budget = vmem_limit_bytes // 2

    def _fits(tk):
        working = (2 * c_tile * tk * feat_isz        # double-buffered feat tile
                   + c_tile * n_block * 4            # f32 accumulator
                   + 2 * c_tile * n_block * 4        # double-buffered out tile
                   + 4 * n_block * tk * 4)           # wx/wy/w + slack temps
        return working <= budget

    if HW % 128 == 0:
        tk = 128
        for cand in (4096, 2048, 1024, 512, 256):
            if HW % cand == 0 and _fits(cand):
                tk = cand
                break
    else:
        tk = HW
    k_blocks = HW // tk

    grid = (B, c_blocks, n_blocks, k_blocks)

    kernel = functools.partial(_interp_kernel, W=W, TK=tk, matmul_dtype=matmul_dtype)
    out_cn = pl.pallas_call(
        kernel,
        out_shape=jax.ShapeDtypeStruct((B, C, n_pad), out_dtype),
        grid_spec=pltpu.PrefetchScalarGridSpec(
            num_scalar_prefetch=0,
            grid=grid,
            in_specs=[
                pl.BlockSpec((1, n_block, 2), lambda b, c, n, k: (b, n, 0)),
                pl.BlockSpec((1, c_tile, tk), lambda b, c, n, k: (b, c, k)),
            ],
            out_specs=pl.BlockSpec((1, c_tile, n_block), lambda b, c, n, k: (b, c, n)),
            scratch_shapes=[pltpu.VMEM((c_tile, n_block), jnp.float32)],
        ),
        compiler_params=pltpu.CompilerParams(
            dimension_semantics=("parallel", "parallel", "parallel", "arbitrary"),
            vmem_limit_bytes=vmem_limit_bytes,
        ),
    )(pa, feat)

    # (B, C, n_pad) -> (B, N, C): tiny transpose compared to the feature maps.
    return jnp.transpose(out_cn[:, :, :N], (0, 2, 1))


def _reference(feature_maps, init_potential_anchor):
    """Pure-JAX port of the torch module, for verification."""
    B, C, H, W = feature_maps.shape
    pa = jnp.clip(init_potential_anchor * H, 0.0, H - 1)            # (B, N, 2)
    lt = jnp.floor(pa).astype(jnp.int32)
    rb = jnp.ceil(pa).astype(jnp.int32)
    lb = jnp.stack([lt[:, :, 0], rb[:, :, 1]], axis=2)
    rt = jnp.stack([rb[:, :, 0], lt[:, :, 1]], axis=2)

    flat = feature_maps.reshape(B, C, H * W)                        # (B, C, HW)

    def gather(anc):
        idx = anc[:, :, 1] * H + anc[:, :, 0]                       # (B, N)
        g = jax.vmap(lambda f, i: jnp.take(f, i, axis=1))(flat, idx)  # (B, C, N)
        return jnp.transpose(g, (0, 2, 1))                          # (B, N, C)

    v_lt, v_rb, v_lb, v_rt = gather(lt), gather(rb), gather(lb), gather(rt)
    off = pa - lt.astype(pa.dtype)
    v_t = v_lt + (v_rt - v_lt) * off[:, :, 0:1]
    v_b = v_lb + (v_rb - v_lb) * off[:, :, 0:1]
    return v_t + (v_b - v_t) * off[:, :, 1:2]


if __name__ == "__main__":
    key = jax.random.PRNGKey(0)
    k1, k2 = jax.random.split(key)

    B, C, H, W, N = 2, 8, 16, 16, 8
    feature_maps = jax.random.normal(k1, (B, C, H, W), dtype=jnp.float32)
    # anchors in [0, 1], scaled by H inside the layer
    init_potential_anchor = jax.random.uniform(k2, (B, N, 2), dtype=jnp.float32)

    out = interpolation_layer(feature_maps, init_potential_anchor)
    out = jax.block_until_ready(out)

    ref = _reference(feature_maps, init_potential_anchor)
    assert out.shape == (B, N, C)
    assert jnp.allclose(out, ref, rtol=1e-5, atol=1e-5)

    print("KERNEL_OK")
</pallas_src>

<mosaic_0001>
module attributes {stable_mosaic.version = 11 : i64} {
  func.func @_interp_kernel(%arg0: i32, %arg1: i32, %arg2: i32, %arg3: i32, %arg4: memref<1x128x2xf32, #tpu.memory_space<vmem>>, %arg5: memref<1x8x256xf32, #tpu.memory_space<vmem>>, %arg6: memref<1x8x128xf32, #tpu.memory_space<vmem>>, %arg7: memref<8x128xf32, #tpu.memory_space<vmem>>) attributes {dimension_semantics = [#tpu.dimension_semantics<parallel>, #tpu.dimension_semantics<parallel>, #tpu.dimension_semantics<parallel>, #tpu.dimension_semantics<arbitrary>], iteration_bounds = array<i64: 2, 1, 1, 1>, scalar_prefetch = 0 : i64, scratch_operands = 1 : i64, tpu.core_type = #tpu.core_type<tc>, window_params = [{transform_indices = @transform_0, window_bounds = array<i64: 1, 128, 2>}, {transform_indices = @transform_1, window_bounds = array<i64: 1, 8, 256>}, {transform_indices = @transform_2, window_bounds = array<i64: 1, 8, 128>}]} {
    %c0_i32 = arith.constant 0 : i32
    %0 = arith.cmpi eq, %arg3, %c0_i32 : i32
    %1 = arith.extui %0 : i1 to i32
    %c0_i32_0 = arith.constant 0 : i32
    %2 = arith.cmpi ne, %1, %c0_i32_0 : i32
    scf.if %2 {
      %cst_23 = arith.constant 0.000000e+00 : f32
      %57 = vector.broadcast %cst_23 : f32 to vector<8x128xf32>
      %c0_24 = arith.constant 0 : index
      %c0_25 = arith.constant 0 : index
      %58 = vector.load %arg7[%c0_24, %c0_25] : memref<8x128xf32, #tpu.memory_space<vmem>>, vector<8x128xf32>
      tpu.vector_store %arg7[%c0_24, %c0_25], %57 {strides = array<i32>} : memref<8x128xf32, #tpu.memory_space<vmem>>, vector<8x128xf32>,
    } else {
    }
    %c0 = arith.constant 0 : index
    %c0_1 = arith.constant 0 : index
    %c0_2 = arith.constant 0 : index
    %3 = vector.load %arg4[%c0, %c0_1, %c0_2] : memref<1x128x2xf32, #tpu.memory_space<vmem>>, vector<1x128x2xf32>
    %4 = vector.shape_cast %3 : vector<1x128x2xf32> to vector<128x2xf32>
    %5 = vector.extract_strided_slice %4 {offsets = [0, 0], sizes = [128, 1], strides = [1, 1]} : vector<128x2xf32> to vector<128x1xf32>
    %6 = vector.extract_strided_slice %4 {offsets = [0, 1], sizes = [128, 1], strides = [1, 1]} : vector<128x2xf32> to vector<128x1xf32>
    %7 = tpu.iota {dimensions = array<i32: 1>} : vector<1x256xi32>
    %c256_i32 = arith.constant 256 : i32
    %8 = arith.muli %arg3, %c256_i32 : i32
    %9 = vector.broadcast %8 : i32 to vector<1x256xi32>
    %10 = arith.addi %7, %9 : vector<1x256xi32>
    %11 = arith.sitofp %10 : vector<1x256xi32> to vector<1x256xf32>
    %cst = arith.constant 1.600000e+01 : f32
    %12 = vector.broadcast %cst : f32 to vector<1x256xf32>
    %13 = arith.divf %11, %12 : vector<1x256xf32>
    %14 = math.floor %13 : vector<1x256xf32>
    %cst_3 = arith.constant 1.600000e+01 : f32
    %15 = vector.broadcast %cst_3 : f32 to vector<1x256xf32>
    %16 = arith.mulf %14, %15 : vector<1x256xf32>
    %17 = arith.subf %11, %16 : vector<1x256xf32>
    %cst_4 = arith.constant 0.000000e+00 : f32
    %18 = vector.broadcast %cst_4 : f32 to vector<1x256xf32>
    %19 = arith.cmpf olt, %17, %18 : vector<1x256xf32>
    %cst_5 = arith.constant 1.000000e+00 : f32
    %20 = vector.broadcast %cst_5 : f32 to vector<1x256xf32>
    %21 = arith.subf %14, %20 : vector<1x256xf32>
    %cst_6 = arith.constant 1.600000e+01 : f32
    %22 = vector.broadcast %cst_6 : f32 to vector<1x256xf32>
    %23 = arith.cmpf oge, %17, %22 : vector<1x256xf32>
    %cst_7 = arith.constant 1.000000e+00 : f32
    %24 = vector.broadcast %cst_7 : f32 to vector<1x256xf32>
    %25 = arith.addf %14, %24 : vector<1x256xf32>
    %26 = arith.select %23, %25, %14 : vector<1x256xi1>, vector<1x256xf32>
    %27 = arith.select %19, %21, %26 : vector<1x256xi1>, vector<1x256xf32>
    %cst_8 = arith.constant 1.600000e+01 : f32
    %28 = vector.broadcast %cst_8 : f32 to vector<1x256xf32>
    %29 = arith.mulf %27, %28 : vector<1x256xf32>
    %30 = arith.subf %11, %29 : vector<1x256xf32>
    %31 = vector.broadcast %30 : vector<1x256xf32> to vector<128x256xf32>
    %32 = vector.broadcast %5 : vector<128x1xf32> to vector<128x256xf32>
    %33 = arith.subf %31, %32 : vector<128x256xf32>
    %34 = math.absf %33 : vector<128x256xf32>
    %cst_9 = arith.constant 1.000000e+00 : f32
    %35 = vector.broadcast %cst_9 : f32 to vector<128x256xf32>
    %36 = arith.subf %35, %34 : vector<128x256xf32>
    %cst_10 = arith.constant 0.000000e+00 : f32
    %37 = vector.broadcast %cst_10 : f32 to vector<128x256xf32>
    %38 = arith.maximumf %37, %36 : vector<128x256xf32>
    %39 = vector.broadcast %27 : vector<1x256xf32> to vector<128x256xf32>
    %40 = vector.broadcast %6 : vector<128x1xf32> to vector<128x256xf32>
    %41 = arith.subf %39, %40 : vector<128x256xf32>
    %42 = math.absf %41 : vector<128x256xf32>
    %cst_11 = arith.constant 1.000000e+00 : f32
    %43 = vector.broadcast %cst_11 : f32 to vector<128x256xf32>
    %44 = arith.subf %43, %42 : vector<128x256xf32>
    %cst_12 = arith.constant 0.000000e+00 : f32
    %45 = vector.broadcast %cst_12 : f32 to vector<128x256xf32>
    %46 = arith.maximumf %45, %44 : vector<128x256xf32>
    %47 = arith.mulf %38, %46 : vector<128x256xf32>
    %c0_13 = arith.constant 0 : index
    %c0_14 = arith.constant 0 : index
    %c0_15 = arith.constant 0 : index
    %48 = vector.load %arg5[%c0_13, %c0_14, %c0_15] : memref<1x8x256xf32, #tpu.memory_space<vmem>>, vector<1x8x256xf32>
    %49 = vector.shape_cast %48 : vector<1x8x256xf32> to vector<8x256xf32>
    %c0_16 = arith.constant 0 : index
    %c0_17 = arith.constant 0 : index
    %50 = vector.load %arg7[%c0_16, %c0_17] : memref<8x128xf32, #tpu.memory_space<vmem>>, vector<8x128xf32>
    %cst_18 = arith.constant dense<0.000000e+00> : vector<8x128xf32>
    %51 = tpu.matmul %49, %47, %cst_18 {dimension_numbers = #tpu.dot_dimension_numbers<[1], [1], [0], [0], [0, 0, 1, 0], [], []>} : vector<8x256xf32>, vector<128x256xf32>, vector<8x128xf32> -> vector<8x128xf32>
    %52 = arith.addf %50, %51 : vector<8x128xf32>
    %c0_19 = arith.constant 0 : index
    %c0_20 = arith.constant 0 : index
    %53 = vector.load %arg7[%c0_19, %c0_20] : memref<8x128xf32, #tpu.memory_space<vmem>>, vector<8x128xf32>
    tpu.vector_store %arg7[%c0_19, %c0_20], %52 {strides = array<i32>} : memref<8x128xf32, #tpu.memory_space<vmem>>, vector<8x128xf32>,
    %c0_i32_21 = arith.constant 0 : i32
    %54 = arith.cmpi eq, %arg3, %c0_i32_21 : i32
    %55 = arith.extui %54 : i1 to i32
    %c0_i32_22 = arith.constant 0 : i32
    %56 = arith.cmpi ne, %55, %c0_i32_22 : i32
    scf.if %56 {
      %c0_23 = arith.constant 0 : index
      %c0_24 = arith.constant 0 : index
      %57 = vector.load %arg7[%c0_23, %c0_24] : memref<8x128xf32, #tpu.memory_space<vmem>>, vector<8x128xf32>
      %c0_25 = arith.constant 0 : index
      %c0_26 = arith.constant 0 : index
      %c0_27 = arith.constant 0 : index
      %58 = vector.load %arg6[%c0_25, %c0_26, %c0_27] : memref<1x8x128xf32, #tpu.memory_space<vmem>>, vector<1x8x128xf32>
      %59 = vector.shape_cast %58 : vector<1x8x128xf32> to vector<8x128xf32>
      %60 = vector.shape_cast %57 : vector<8x128xf32> to vector<1x8x128xf32>
      tpu.vector_store %arg6[%c0_25, %c0_26, %c0_27], %60 {strides = array<i32>} : memref<1x8x128xf32, #tpu.memory_space<vmem>>, vector<1x8x128xf32>,
    } else {
    }
    return
  }
  func.func @transform_0(%arg0: i32, %arg1: i32, %arg2: i32, %arg3: i32) -> (i32, i32, i32) {
    %c0_i32 = arith.constant 0 : i32
    %c0_i32_0 = arith.constant 0 : i32
    return %arg0, %arg2, %c0_i32 : i32, i32, i32
  }
  func.func @transform_1(%arg0: i32, %arg1: i32, %arg2: i32, %arg3: i32) -> (i32, i32, i32) {
    %c0_i32 = arith.constant 0 : i32
    return %arg0, %arg1, %arg3 : i32, i32, i32
  }
  func.func @transform_2(%arg0: i32, %arg1: i32, %arg2: i32, %arg3: i32) -> (i32, i32, i32) {
    %c0_i32 = arith.constant 0 : i32
    return %arg0, %arg1, %arg2 : i32, i32, i32
  }
}

</mosaic_0001>

<bundles_post_ra>
// kernel: tpu_custom_call.1
= control target key start
LH: loop header
LB: loop body
LE: loop exit
PB: predicated region body
PF: predicated region fallthrough
CT: control target
= control target key end

     0   :  { %7 = vsyncpa [#allocation4], 0  ;;  %s1388_s0 = inlined_call_operand.vmem [shape: f32[2,128,2], index: 0, kind: input, shape index: {}]   ;;  %s1389_s1 = inlined_call_operand.vmem [shape: f32[2,8,256], index: 1, kind: input, shape index: {}]   ;;  %s1390_s2 = inlined_call_operand.hbm [shape: f32[2,8,128], index: 2, kind: output, shape index: {}]  }
   0x1   :  { %9 = vsyncpa [#allocation4 + $0x1], 0  ;;  %s1152_s9 = smov 0   ;;  %s1154_s10 = smov 0  }
   0x2   :  { %s1156_s11 = smov 0   ;;  %s1158_s12 = smov 0  }
   0x3   :  { %s1160_s13 = smov 0   ;;  %s1162_s14 = smov 0  }
   0x4 LB: > { %s926_s15 = sadd.s32 4294967295, %s1132_s14   ;;  %s927_s16 = sadd.s32 4294967294, %s1132_s14   ;;  %s1132_s14 = sphi %s1162_s14, %s15_s14   ;;  %s1128_s13 = sphi %s1160_s13, %s1397_s13   ;;  %s1124_s12 = sphi %s1158_s12, %s1396_s12   ;;  %s1120_s11 = sphi %s1156_s11, %s1395_s11   ;;  %s1116_s10 = sphi %s1154_s10, %s1394_s10   ;;  %s1112_s9 = sphi %s1152_s9, %s1393_s9  }
   0x5   : > { %s41_s17 = sadd.s32 1, %s1128_s13  ;;  %s110_s18 = sadd.s32 1, %s1120_s11 }
   0x6   : > { %p43_p0 = scmp.ge.s32.totalorder %s41_s17, 2  ;;  %p120_p1 = scmp.ne.s32.totalorder %s1120_s11, %s1116_s10 }
   0x7   : > { %p121_p2 = scmp.eq.s32.totalorder %s926_s15, 1  ;;  %p126_p3 = scmp.ne.s32.totalorder %s1116_s10, %s1112_s9 }
   0x8   : > { %s1399_s17 = smov (%p43_p0, %s41_s17), 0  ;;  %p127_p5 = scmp.eq.s32.totalorder %s927_s16, 1 }
   0x9   : > { %p1192_p4 = por %p121_p2, %p120_p1  ;;  %s103_s20 = ssub.s32 %s1128_s13, %s1399_s17 }
   0xa   : > { %p930_p6 = scmp.ge.s32.totalorder %s1132_s14, 1  ;;  %p108_p7 = scmp.eq.s32.totalorder %s103_s20, 0 }
   0xb   : > { %p1199_p8 = por %p127_p5, %p126_p3  ;;  %p175_p9 = scmp.lt.s32.totalorder %s1132_s14, 3 }
   0xc   : > { %s1205_s22 = scalar_select %p108_p7, %s1120_s11, %s110_s18  }
   0xd   : > { %p176_p10 = pnand %p930_p6, %p175_p9 }
   0xe   : > { %p215_p11 = scmp.lt.s32.totalorder (!%p176_p10), %s1124_s12, 1  ;;  %v1134_v0 = vmov (!%p176_p10), 1   ;;  %v1135_v1 = vmov (!%p176_p10), 0   ;;  %v259_v18 = vlaneseq (!%p176_p10)  ;;  %s211_s4 = sand.u32 (!%p176_p10), 1, %s1116_s10  }
   0xf   : > { %179 = sbr.rel (%p176_p10) target bundleno = 487 (0x1e7), region = 28  ;;  %1034 = vset.pattern.permute.xlu1 (!%p176_p10), %v1134_v0  ;;  %1033 = vset.pattern.permute.xlu0 (!%p176_p10), %v1135_v1  ;;  %s931_s5 = sshll.u32 (!%p176_p10), %s211_s4, 3 }
  0x10   : > { %v260_v19 = vand.u32 (!%p176_p10), 127, %v259_v18  ;;  %s213_s6 = scalar_lea.vmem (!%p176_p10), [#allocation3], %s931_s5  ;;  %s939_s8 = sshll.u32 (!%p176_p10), %s1124_s12, 7 }
  0x11   : > { %s821_s7 = sshll.u32 (!%p176_p10), %s213_s6, 4  ;;  %s1343_s18 = scalar_lea.hbm (!%p176_p10), %s1390_s2, %s939_s8  ;;  %s1338_s7 = int_to_ptr.vmem [resolvable:$true] %s821_s7 }
  0x12   : > { %v261_v20 = vadd.s32 (!%p176_p10), 128, %v260_v19  ;;  %v266_v21 = vcvt.s32.f32 (!%p176_p10), %v260_v19  ;;  %s806_s20 = scalar_lea.sflag (!%p176_p10), [#allocation4], %s211_s4 }
  0x14   : > { %v267_v22 = vcvt.s32.f32 (!%p176_p10), %v261_v20  ;;  %v269_v23 = vmul.f32 (!%p176_p10), 0.0625, %v266_v21 }
  0x16   : > { %s1211_s23 = scalar_select %p215_p11, %s1124_s12, 1  ;;  %v270_v24 = vmul.f32 0.0625, %v267_v22  ;;  %v271_v25 = vfloor.f32 %v269_v23 }
  0x17   : > { %s1136_s12 = smov [#allocation3]  }
  0x18   : > { %s942_s24 = sshll.u32 %s1211_s23, 7  ;;  %v272_v26 = vfloor.f32 %v270_v24  ;;  %s943_s28 = sshll.u32 %s1211_s23, 4  ;;  %v273_v28 = vmul.f32 16.0, %v271_v25  ;;  %v283_v32 = vadd.f32 1.0, %v271_v25  ;;  %v936_v34 = vadd.f32 -1.0, %v271_v25 }
  0x19   : > { %s1217_s27 = scalar_lea.vmem %s1388_s0, %s942_s24  ;;  %s1258_s3 = scalar_lea.vmem %s1389_s1, %s943_s28 }
  0x1a   : > { %v243_v2 = vld [vmem:[%s1217_s27] sm:$0xff]  ;;  %v244_v3 = vld [vmem:[%s1217_s27 + $0x8] sm:$0xff]  ;;  %v245_v4 = vld [vmem:[%s1217_s27 + $0x10] sm:$0xff]  ;;  %v274_v29 = vmul.f32 16.0, %v272_v26  ;;  %v275_v30 = vsub.f32 %v266_v21, %v273_v28  ;;  %v284_v33 = vadd.f32 1.0, %v272_v26  ;;  %v937_v35 = vadd.f32 -1.0, %v272_v26 }
  0x1b   : > { %502 = vperm.xlu1 %1034, %v243_v2   ;;  %295 = vperm.xlu0 %1033, %v243_v2   ;;  %v246_v5 = vld [vmem:[%s1217_s27 + $0x18] sm:$0xff]  ;;  %v249_v6 = vld [vmem:[%s1217_s27 + $0x30] sm:$0xff]  ;;  %v247_v7 = vld [vmem:[%s1217_s27 + $0x20] sm:$0xff]  ;;  %s1054_s23 = scalar_lea.vmem %s1338_s7, 128  ;;  %s1058_s24 = sshll.u32 %s1136_s12, 4  ;;  %s1059_s24 = int_to_ptr.vmem [resolvable:$false] %s1058_s24 }
  0x1c   : > { %v248_v8 = vld [vmem:[%s1217_s27 + $0x28] sm:$0xff]  ;;  %v250_v10 = vld [vmem:[%s1217_s27 + $0x38] sm:$0xff]  ;;  %v253_v11 = vld [vmem:[%s1217_s27 + $0x50] sm:$0xff]  ;;  %v276_v31 = vsub.f32 %v267_v22, %v274_v29  ;;  %vm281_vm0 = vcmp.ge.f32.partialorder %v275_v30, 16.0  ;;  %vm277_vm2 = vcmp.lt.f32.partialorder %v275_v30, 0.0  ;;  %p1055_p12 = scmp.ne.s32.totalorder %s1338_s7, %s1054_s23  ;;  %s1060_s25 = scalar_lea.vmem %s1059_s24, 256 }
  0x1d   : > { %v252_v9 = vld [vmem:[%s1217_s27 + $0x48] sm:$0xff]  ;;  %v251_v12 = vld [vmem:[%s1217_s27 + $0x40] sm:$0xff]  ;;  %v257_v14 = vld [vmem:[%s1217_s27 + $0x70] sm:$0xff]  ;;  %v285_v36 = vsel %vm281_vm0, %v283_v32, %v271_v25  ;;  %p1061_p1 = scmp.lt.s32.totalorder %s1338_s7, %s1059_s24  ;;  %p1062_p2 = scmp.lt.s32.totalorder %s1060_s25, %s1054_s23 }
  0x1e   : > { %v256_v13 = vld [vmem:[%s1217_s27 + $0x68] sm:$0xff]  ;;  %v254_v15 = vld [vmem:[%s1217_s27 + $0x58] sm:$0xff]  ;;  %v255_v16 = vld [vmem:[%s1217_s27 + $0x60] sm:$0xff]  ;;  %vm282_vm1 = vcmp.ge.f32.partialorder %v276_v31, 16.0  ;;  %vm278_vm3 = vcmp.lt.f32.partialorder %v276_v31, 0.0  ;;  %v1261_v38 = vsel %vm277_vm2, %v936_v34, %v285_v36  ;;  %p1056_p13 = pnand %p1055_p12, %p1192_p4 }
  0x1f   : > { %506 = vperm.xlu1 %1034, %v244_v3   ;;  %300 = vperm.xlu0 %1033, %v244_v3   ;;  %v258_v17 = vld [vmem:[%s1217_s27 + $0x78] sm:$0xff]  ;;  %v726_v27 = vld [vmem:[%s1258_s3 + $0x8] sm:$0xff]  ;;  %v286_v37 = vsel %vm282_vm1, %v284_v33, %v272_v26  ;;  %v289_v40 = vmul.f32 16.0, %v1261_v38  ;;  %p1063_p3 = por %p1062_p2, %p1061_p1 }
  0x20   : > { %792 = vmatprep.mubr.f32.mxu0 %v726_v27  ;;  %v1263_v39 = vsel %vm278_vm3, %v937_v35, %v286_v37  ;;  %p1057_p0 = pneg %p1056_p13 }
  0x21   : > { %v290_v41 = vmul.f32 16.0, %v1263_v39  ;;  %v1267_v42 = vsub.f32 %v266_v21, %v289_v40 }
  0x22   : > { %p1064_p5 = pnand %p1063_p3, %p1057_p0 }
  0x23   : > { %1035 = vset.pattern.permute.xlu1 %v1135_v1  ;;  %305 = vperm.xlu0 %1033, %v245_v4   ;;  %v1269_v43 = vsub.f32 %v267_v22, %v290_v41 }
  0x24   : > { %310 = vperm.xlu1 %1035, %v246_v5  }
  0x27   : > { %1036 = vset.pattern.permute.xlu0 %v1134_v0 }
  0x28   : > { %1037 = vset.pattern.permute.xlu1 %v1134_v0  ;;  %510 = vperm.xlu0 %1036, %v245_v4  }
  0x29   : > { %514 = vperm.xlu1 %1037, %v246_v5  }
  0x2c   : > { %526 = vperm.xlu0 %1036, %v249_v6  }
  0x2d   : > { %1038 = vset.pattern.permute.xlu1 %v1135_v1 }
  0x2e   : > { %315 = vperm.xlu1 %1038, %v247_v7  }
  0x30   : > { %1041 = vset.pattern.permute.xlu0 %v1135_v1 }
  0x31   : > { %320 = vperm.xlu0 %1041, %v248_v8  }
  0x32   : > { %1039 = vset.pattern.permute.xlu1 %v1134_v0 }
  0x33   : > { %518 = vperm.xlu1 %1039, %v247_v7  }
  0x35   : > { %325 = vperm.xlu0 %1041, %v249_v6  }
  0x37   : > { %522 = vperm.xlu1 %1039, %v248_v8  }
  0x39   : > { %340 = vperm.xlu0 %1041, %v252_v9  }
  0x3b   : > { %1040 = vset.pattern.permute.xlu1 %v1135_v1 }
  0x3c   : > { %330 = vperm.xlu1 %1040, %v250_v10  }
  0x3d   : > { %1046 = vset.pattern.permute.xlu0 %v1134_v0 }
  0x3e   : > { %542 = vperm.xlu0 %1046, %v253_v11  }
  0x40   : > { %1042 = vset.pattern.permute.xlu1 %v1134_v0 }
  0x41   : > { %530 = vperm.xlu1 %1042, %v250_v10  }
  0x42   : > { %1047 = vset.pattern.permute.xlu0 %v1135_v1 }
  0x43   : > { %345 = vperm.xlu0 %1047, %v253_v11  }
  0x45   : > { %1043 = vset.pattern.permute.xlu1 %v1135_v1 }
  0x46   : > { %335 = vperm.xlu1 %1043, %v251_v12  }
  0x47   : > { %360 = vperm.xlu0 %1047, %v256_v13  }
  0x4a   : > { %1044 = vset.pattern.permute.xlu1 %v1134_v0 }
  0x4b   : > { %534 = vperm.xlu1 %1044, %v251_v12   ;;  %365 = vperm.xlu0 %1047, %v257_v14  }
  0x4f   : > { %538 = vperm.xlu1 %1044, %v252_v9   ;;  %1052 = vset.pattern.permute.xlu0 %v1134_v0 }
  0x50   : > { %558 = vperm.xlu0 %1052, %v257_v14  }
  0x53   : > { %1045 = vset.pattern.permute.xlu1 %v1135_v1 }
  0x54   : > { %350 = vperm.xlu1 %1045, %v254_v15  }
  0x58   : > { %1048 = vset.pattern.permute.xlu1 %v1134_v0 }
  0x59   : > { %546 = vperm.xlu1 %1048, %v254_v15  }
  0x5d   : > { %1049 = vset.pattern.permute.xlu1 %v1135_v1 }
  0x5e   : > { %355 = vperm.xlu1 %1049, %v255_v16  }
  0x62   : > { %1050 = vset.pattern.permute.xlu1 %v1134_v0 }
  0x63   : > { %550 = vperm.xlu1 %1050, %v255_v16  }
  0x67   : > { %554 = vperm.xlu1 %1050, %v256_v13  }
  0x6b   : > { %1051 = vset.pattern.permute.xlu1 %v1135_v1 }
  0x6c   : > { %370 = vperm.xlu1 %1051, %v258_v17  }
  0x70   : > { %1053 = vset.pattern.permute.xlu1 %v1134_v0 }
  0x71   : > { %562 = vperm.xlu1 %1053, %v258_v17  }
  0x9a   : > { %v503_v44 = vpop.permute.xlu1 %502  ;;  %v296_v45 = vpop.permute.xlu0 %295 }
  0x9b   : > { %v565_v46 = vsub.f32 %v1261_v38, %v503_v44  ;;  %v566_v47 = vsub.f32 %v1263_v39, %v503_v44  ;;  %v373_v48 = vsub.f32 %v1267_v42, %v296_v45  ;;  %v374_v49 = vsub.f32 %v1269_v43, %v296_v45 }
  0x9d   : > { %v597_v50 = vand.u32 2147483647, %v565_v46  ;;  %v598_v51 = vand.u32 2147483647, %v566_v47  ;;  %v405_v52 = vand.u32 2147483647, %v373_v48 }
  0x9e   : > { %v406_v53 = vand.u32 2147483647, %v374_v49  ;;  %v507_v54 = vpop.permute.xlu1 %506  ;;  %v301_v55 = vpop.permute.xlu0 %300 }
  0x9f   : > { %v630_v56 = vsub.f32 1.0, %v598_v51  ;;  %v567_v57 = vsub.f32 %v1261_v38, %v507_v54  ;;  %v568_v58 = vsub.f32 %v1263_v39, %v507_v54  ;;  %v375_v59 = vsub.f32 %v1267_v42, %v301_v55 }
  0xa0   : > { %v376_v60 = vsub.f32 %v1269_v43, %v301_v55  ;;  %v629_v61 = vsub.f32 1.0, %v597_v50  ;;  %v438_v62 = vsub.f32 1.0, %v406_v53  ;;  %v437_v1 = vsub.f32 1.0, %v405_v52 }
  0xa1   : > { %v599_v63 = vand.u32 2147483647, %v567_v57  ;;  %v662_v0 = vmax.f32 %v630_v56, 0.0  ;;  %v600_v2 = vand.u32 2147483647, %v568_v58 }
  0xa2   : > { %v407_v3 = vand.u32 2147483647, %v375_v59  ;;  %v306_v4 = vpop.permute.xlu0 %305  ;;  %v408_v6 = vand.u32 2147483647, %v376_v60  ;;  %v470_v14 = vmax.f32 %v438_v62, 0.0  ;;  %v661_v18 = vmax.f32 %v629_v61, 0.0 }
  0xa3   : > { %v631_v5 = vsub.f32 1.0, %v599_v63  ;;  %v311_v7 = vpop.permute.xlu1 %310  ;;  %v377_v8 = vsub.f32 %v1267_v42, %v306_v4  ;;  %v378_v9 = vsub.f32 %v1269_v43, %v306_v4  ;;  %v632_v10 = vsub.f32 1.0, %v600_v2 }
  0xa4   : > { %v439_v11 = vsub.f32 1.0, %v407_v3  ;;  %v379_v12 = vsub.f32 %v1267_v42, %v311_v7  ;;  %v380_v13 = vsub.f32 %v1269_v43, %v311_v7  ;;  %v440_v15 = vsub.f32 1.0, %v408_v6 }
  0xa5   : > { %v409_v16 = vand.u32 2147483647, %v377_v8  ;;  %v410_v17 = vand.u32 2147483647, %v378_v9  ;;  %v469_v19 = vmax.f32 %v437_v1, 0.0  ;;  %v664_v22 = vmax.f32 %v632_v10, 0.0 }
  0xa6   : > { %v411_v20 = vand.u32 2147483647, %v379_v12  ;;  %v412_v21 = vand.u32 2147483647, %v380_v13  ;;  %v472_v23 = vmax.f32 %v440_v15, 0.0  ;;  %v663_v27 = vmax.f32 %v631_v5, 0.0 }
  0xa7   : > { %v441_v24 = vsub.f32 1.0, %v409_v16  ;;  %v442_v25 = vsub.f32 1.0, %v410_v17  ;;  %v511_v26 = vpop.permute.xlu0 %510  ;;  %v471_v28 = vmax.f32 %v439_v11, 0.0  ;;  %v694_v35 = vmul.f32 %v662_v0, %v470_v14 }
  0xa8   : > { %v515_v29 = vpop.permute.xlu1 %514  ;;  %v569_v30 = vsub.f32 %v1261_v38, %v511_v26  ;;  %v570_v31 = vsub.f32 %v1263_v39, %v511_v26  ;;  %v443_v32 = vsub.f32 1.0, %v411_v20  ;;  %v444_v36 = vsub.f32 1.0, %v412_v21 }
  0xa9   : > { %v571_v33 = vsub.f32 %v1261_v38, %v515_v29  ;;  %v572_v34 = vsub.f32 %v1263_v39, %v515_v29  ;;  %v473_v37 = vmax.f32 %v441_v24, 0.0  ;;  %v474_v44 = vmax.f32 %v442_v25, 0.0 }
  0xaa   : > { %v601_v40 = vand.u32 2147483647, %v569_v30  ;;  %v602_v41 = vand.u32 2147483647, %v570_v31  ;;  %v696_v47 = vmul.f32 %v664_v22, %v472_v23  ;;  %v693_v51 = vmul.f32 %v661_v18, %v469_v19 }
  0xab   : > { %v603_v45 = vand.u32 2147483647, %v571_v33  ;;  %v604_v46 = vand.u32 2147483647, %v572_v34  ;;  %v527_v48 = vpop.permute.xlu0 %526  ;;  %v695_v52 = vmul.f32 %v663_v27, %v471_v28  ;;  %v475_v60 = vmax.f32 %v443_v32, 0.0 }
  0xac   : > { %v633_v49 = vsub.f32 1.0, %v601_v40  ;;  %v634_v50 = vsub.f32 1.0, %v602_v41  ;;  %v944_v55 = vpack.c.bf16 %v696_v47, %v694_v35  ;;  %v476_v61 = vmax.f32 %v444_v36, 0.0 }
  0xad   : > { %v635_v53 = vsub.f32 1.0, %v603_v45  ;;  %v636_v54 = vsub.f32 1.0, %v604_v46  ;;  %v316_v56 = vpop.permute.xlu1 %315  ;;  %v946_v59 = vpack.c.bf16 %v695_v52, %v693_v51  ;;  %v577_v7 = vsub.f32 %v1261_v38, %v527_v48 }
  0xae   : > { %v665_v57 = vmax.f32 %v633_v49, 0.0  ;;  %v666_v58 = vmax.f32 %v634_v50, 0.0  ;;  %945 = vmatprep.subr.bf16.mxu0 %v944_v55  ;;  %v381_v2 = vsub.f32 %v1267_v42, %v316_v56  ;;  %v382_v3 = vsub.f32 %v1269_v43, %v316_v56 }
  0xaf   : > { %v667_v62 = vmax.f32 %v635_v53, 0.0  ;;  %v668_v63 = vmax.f32 %v636_v54, 0.0  ;;  %947 = vmatpush1.bf16.xpose.msra.mxu0 %v946_v59  ;;  %v578_v20 = vsub.f32 %v1263_v39, %v527_v48  ;;  %v609_v21 = vand.u32 2147483647, %v577_v7 }
  0xb0   : > { %v697_v0 = vmul.f32 %v665_v57, %v473_v37  ;;  %v698_v1 = vmul.f32 %v666_v58, %v474_v44  ;;  %v321_v4 = vpop.permute.xlu0 %320  ;;  %v413_v13 = vand.u32 2147483647, %v381_v2  ;;  %v414_v14 = vand.u32 2147483647, %v382_v3 }
  0xb1   : > { %v699_v5 = vmul.f32 %v667_v62, %v475_v60  ;;  %v700_v6 = vmul.f32 %v668_v63, %v476_v61  ;;  %v383_v9 = vsub.f32 %v1267_v42, %v321_v4  ;;  %v384_v10 = vsub.f32 %v1269_v43, %v321_v4 }
  0xb2   : > { %v519_v8 = vpop.permute.xlu1 %518  ;;  %v445_v31 = vsub.f32 1.0, %v413_v13  ;;  %v446_v32 = vsub.f32 1.0, %v414_v14  ;;  %v610_v35 = vand.u32 2147483647, %v578_v20  ;;  %v641_v55 = vsub.f32 1.0, %v609_v21 }
  0xb3   : > { %v573_v11 = vsub.f32 %v1261_v38, %v519_v8  ;;  %v574_v12 = vsub.f32 %v1263_v39, %v519_v8  ;;  %v948_v15 = vpack.c.bf16 %v700_v6, %v698_v1  ;;  %v950_v16 = vpack.c.bf16 %v699_v5, %v697_v0 }
  0xb4   : > { %v326_v17 = vpop.permute.xlu0 %325  ;;  %v415_v23 = vand.u32 2147483647, %v383_v9  ;;  %v416_v24 = vand.u32 2147483647, %v384_v10  ;;  %v477_v51 = vmax.f32 %v445_v31, 0.0  ;;  %v478_v52 = vmax.f32 %v446_v32, 0.0 }
  0xb5   : > { %v605_v18 = vand.u32 2147483647, %v573_v11  ;;  %v606_v19 = vand.u32 2147483647, %v574_v12  ;;  %949 = vmatprep.subr.bf16.mxu0 %v948_v15  ;;  %v385_v25 = vsub.f32 %v1267_v42, %v326_v17  ;;  %v386_v26 = vsub.f32 %v1269_v43, %v326_v17 }
  0xb6   : > { %v523_v22 = vpop.permute.xlu1 %522  ;;  %v447_v33 = vsub.f32 1.0, %v415_v23  ;;  %v448_v34 = vsub.f32 1.0, %v416_v24  ;;  %v642_v56 = vsub.f32 1.0, %v610_v35  ;;  %v673_v8 = vmax.f32 %v641_v55, 0.0 }
  0xb7   : > { %v637_v27 = vsub.f32 1.0, %v605_v18  ;;  %v638_v28 = vsub.f32 1.0, %v606_v19  ;;  %v575_v29 = vsub.f32 %v1261_v38, %v523_v22  ;;  %v576_v30 = vsub.f32 %v1263_v39, %v523_v22  ;;  %951 = vmatpush1.bf16.xpose.msra.mxu0 %v950_v16 }
  0xb8   : > { %v417_v44 = vand.u32 2147483647, %v385_v25  ;;  %v418_v45 = vand.u32 2147483647, %v386_v26  ;;  %v479_v48 = vmax.f32 %v447_v33, 0.0  ;;  %v480_v49 = vmax.f32 %v448_v34, 0.0  ;;  %v341_v16 = vpop.permute.xlu0 %340 }
  0xb9   : > { %v607_v36 = vand.u32 2147483647, %v575_v29  ;;  %v608_v37 = vand.u32 2147483647, %v576_v30  ;;  %v669_v40 = vmax.f32 %v637_v27, 0.0  ;;  %v670_v41 = vmax.f32 %v638_v28, 0.0 }
  0xba   : > { %v449_v61 = vsub.f32 1.0, %v417_v44  ;;  %v450_v62 = vsub.f32 1.0, %v418_v45  ;;  %v674_v9 = vmax.f32 %v642_v56, 0.0  ;;  %v391_v22 = vsub.f32 %v1267_v42, %v341_v16 }
  0xbb   : > { %v639_v46 = vsub.f32 1.0, %v607_v36  ;;  %v640_v47 = vsub.f32 1.0, %v608_v37  ;;  %v331_v50 = vpop.permute.xlu1 %330  ;;  %v701_v59 = vmul.f32 %v669_v40, %v477_v51  ;;  %v702_v60 = vmul.f32 %v670_v41, %v478_v52 }
  0xbc   : > { %v387_v53 = vsub.f32 %v1267_v42, %v331_v50  ;;  %v388_v54 = vsub.f32 %v1269_v43, %v331_v50  ;;  %v481_v10 = vmax.f32 %v449_v61, 0.0  ;;  %v482_v11 = vmax.f32 %v450_v62, 0.0 }
  0xbd   : > { %v671_v57 = vmax.f32 %v639_v46, 0.0  ;;  %v672_v58 = vmax.f32 %v640_v47, 0.0  ;;  %v392_v23 = vsub.f32 %v1269_v43, %v341_v16  ;;  %v543_v28 = vpop.permute.xlu0 %542  ;;  %v423_v33 = vand.u32 2147483647, %v391_v22 }
  0xbe   : > { %v419_v1 = vand.u32 2147483647, %v387_v53  ;;  %v420_v2 = vand.u32 2147483647, %v388_v54  ;;  %v705_v20 = vmul.f32 %v673_v8, %v481_v10  ;;  %v706_v21 = vmul.f32 %v674_v9, %v482_v11 }
  0xbf   : > { %v703_v63 = vmul.f32 %v671_v57, %v479_v48  ;;  %v704_v0 = vmul.f32 %v672_v58, %v480_v49  ;;  %v424_v34 = vand.u32 2147483647, %v392_v23  ;;  %v585_v46 = vsub.f32 %v1261_v38, %v543_v28 }
  0xc0   : > { %v531_v3 = vpop.permute.xlu1 %530  ;;  %v451_v12 = vsub.f32 1.0, %v419_v1  ;;  %v452_v13 = vsub.f32 1.0, %v420_v2  ;;  %v586_v49 = vsub.f32 %v1263_v39, %v543_v28  ;;  %v455_v51 = vsub.f32 1.0, %v423_v33 }
  0xc1   : > { %v579_v4 = vsub.f32 %v1261_v38, %v531_v3  ;;  %v580_v5 = vsub.f32 %v1263_v39, %v531_v3  ;;  %v952_v6 = vpack.c.bf16 %v704_v0, %v702_v60  ;;  %v954_v7 = vpack.c.bf16 %v703_v63, %v701_v59 }
  0xc2   : > { %v483_v24 = vmax.f32 %v451_v12, 0.0  ;;  %v484_v25 = vmax.f32 %v452_v13, 0.0  ;;  %v346_v50 = vpop.permute.xlu0 %345  ;;  %v456_v52 = vsub.f32 1.0, %v424_v34  ;;  %v617_v62 = vand.u32 2147483647, %v585_v46 }
  0xc3   : > { %v611_v14 = vand.u32 2147483647, %v579_v4  ;;  %v612_v15 = vand.u32 2147483647, %v580_v5  ;;  %953 = vmatprep.subr.bf16.mxu0 %v952_v6  ;;  %v393_v54 = vsub.f32 %v1267_v42, %v346_v50  ;;  %v394_v55 = vsub.f32 %v1269_v43, %v346_v50 }
  0xc4   : > { %955 = vmatpush1.bf16.xpose.msra.mxu0 %v954_v7  ;;  %v618_v1 = vand.u32 2147483647, %v586_v49  ;;  %v487_v6 = vmax.f32 %v455_v51, 0.0  ;;  %v488_v7 = vmax.f32 %v456_v52, 0.0 }
  0xc5   : > { %v643_v17 = vsub.f32 1.0, %v611_v14  ;;  %v644_v18 = vsub.f32 1.0, %v612_v15  ;;  %v336_v19 = vpop.permute.xlu1 %335  ;;  %v425_v4 = vand.u32 2147483647, %v393_v54  ;;  %v426_v5 = vand.u32 2147483647, %v394_v55 }
  0xc6   : > { %v389_v29 = vsub.f32 %v1267_v42, %v336_v19  ;;  %v390_v30 = vsub.f32 %v1269_v43, %v336_v19 }
  0xc7   : > { %v675_v26 = vmax.f32 %v643_v17, 0.0  ;;  %v676_v27 = vmax.f32 %v644_v18, 0.0  ;;  %v649_v17 = vsub.f32 1.0, %v617_v62  ;;  %v650_v18 = vsub.f32 1.0, %v618_v1 }
  0xc8   : > { %v421_v44 = vand.u32 2147483647, %v389_v29  ;;  %v422_v45 = vand.u32 2147483647, %v390_v30  ;;  %v458_v22 = vsub.f32 1.0, %v426_v5 }
  0xc9   : > { %v707_v31 = vmul.f32 %v675_v26, %v483_v24  ;;  %v708_v32 = vmul.f32 %v676_v27, %v484_v25  ;;  %v361_v27 = vpop.permute.xlu0 %360  ;;  %v681_v33 = vmax.f32 %v649_v17, 0.0  ;;  %v682_v34 = vmax.f32 %v650_v18, 0.0 }
  0xca   : > { %v535_v35 = vpop.permute.xlu1 %534  ;;  %v453_v60 = vsub.f32 1.0, %v421_v44  ;;  %v454_v61 = vsub.f32 1.0, %v422_v45  ;;  %v399_v55 = vsub.f32 %v1267_v42, %v361_v27 }
  0xcb   : > { %v581_v36 = vsub.f32 %v1261_v38, %v535_v35  ;;  %v582_v37 = vsub.f32 %v1263_v39, %v535_v35  ;;  %v956_v40 = vpack.c.bf16 %v708_v32, %v706_v21  ;;  %v958_v41 = vpack.c.bf16 %v707_v31, %v705_v20 }
  0xcc   : > { %v485_v11 = vmax.f32 %v453_v60, 0.0  ;;  %v486_v12 = vmax.f32 %v454_v61, 0.0  ;;  %v457_v21 = vsub.f32 1.0, %v425_v4  ;;  %v400_v60 = vsub.f32 %v1269_v43, %v361_v27 }
  0xcd   : > { %v613_v47 = vand.u32 2147483647, %v581_v36  ;;  %v614_v48 = vand.u32 2147483647, %v582_v37  ;;  %957 = vmatprep.subr.bf16.mxu0 %v956_v40  ;;  %v490_v36 = vmax.f32 %v458_v22, 0.0 }
  0xce   : > { %v539_v53 = vpop.permute.xlu1 %538  ;;  %959 = vmatpush1.bf16.xpose.msra.mxu0 %v958_v41  ;;  %v489_v35 = vmax.f32 %v457_v21, 0.0 }
  0xcf   : > { %v645_v56 = vsub.f32 1.0, %v613_v47  ;;  %v646_v57 = vsub.f32 1.0, %v614_v48  ;;  %v583_v58 = vsub.f32 %v1261_v38, %v539_v53  ;;  %v584_v59 = vsub.f32 %v1263_v39, %v539_v53  ;;  %v366_v47 = vpop.permute.xlu0 %365 }
  0xd0   : > { %v713_v49 = vmul.f32 %v681_v33, %v489_v35  ;;  %v714_v50 = vmul.f32 %v682_v34, %v490_v36 }
  0xd1   : > { %v615_v63 = vand.u32 2147483647, %v583_v58  ;;  %v616_v0 = vand.u32 2147483647, %v584_v59  ;;  %v677_v2 = vmax.f32 %v645_v56, 0.0  ;;  %v678_v3 = vmax.f32 %v646_v57, 0.0 }
  0xd3   : > { %v647_v8 = vsub.f32 1.0, %v615_v63  ;;  %v648_v9 = vsub.f32 1.0, %v616_v0  ;;  %v351_v10 = vpop.permute.xlu1 %350  ;;  %v709_v19 = vmul.f32 %v677_v2, %v485_v11  ;;  %v710_v20 = vmul.f32 %v678_v3, %v486_v12  ;;  %v559_v62 = vpop.permute.xlu0 %558 }
  0xd4   : > { %v395_v13 = vsub.f32 %v1267_v42, %v351_v10  ;;  %v396_v14 = vsub.f32 %v1269_v43, %v351_v10  ;;  %v431_v3 = vand.u32 2147483647, %v399_v55  ;;  %v402_v10 = vsub.f32 %v1269_v43, %v366_v47 }
  0xd5   : > { %v679_v15 = vmax.f32 %v647_v8, 0.0  ;;  %v680_v16 = vmax.f32 %v648_v9, 0.0  ;;  %v401_v9 = vsub.f32 %v1267_v42, %v366_v47  ;;  %v593_v11 = vsub.f32 %v1261_v38, %v559_v62 }
  0xd6   : > { %v427_v25 = vand.u32 2147483647, %v395_v13  ;;  %v428_v26 = vand.u32 2147483647, %v396_v14  ;;  %v594_v12 = vsub.f32 %v1263_v39, %v559_v62 }
  0xd7   : > { %v711_v23 = vmul.f32 %v679_v15, %v487_v6  ;;  %v712_v24 = vmul.f32 %v680_v16, %v488_v7  ;;  %v432_v6 = vand.u32 2147483647, %v400_v60 }
  0xd8   : > { %v547_v28 = vpop.permute.xlu1 %546  ;;  %v459_v37 = vsub.f32 1.0, %v427_v25  ;;  %v460_v40 = vsub.f32 1.0, %v428_v26  ;;  %v434_v25 = vand.u32 2147483647, %v402_v10 }
  0xd9   : > { %v587_v29 = vsub.f32 %v1261_v38, %v547_v28  ;;  %v588_v30 = vsub.f32 %v1263_v39, %v547_v28  ;;  %v960_v31 = vpack.c.bf16 %v712_v24, %v710_v20  ;;  %v962_v32 = vpack.c.bf16 %v711_v23, %v709_v19 }
  0xda   : > { %v491_v51 = vmax.f32 %v459_v37, 0.0  ;;  %v492_v52 = vmax.f32 %v460_v40, 0.0  ;;  %v463_v20 = vsub.f32 1.0, %v431_v3  ;;  %v464_v21 = vsub.f32 1.0, %v432_v6 }
  0xdb   : > { %v619_v41 = vand.u32 2147483647, %v587_v29  ;;  %v620_v44 = vand.u32 2147483647, %v588_v30  ;;  %961 = vmatprep.subr.bf16.mxu0 %v960_v31  ;;  %v433_v24 = vand.u32 2147483647, %v401_v9 }
  0xdc   : > { %963 = vmatpush1.bf16.xpose.msra.mxu0 %v962_v32  ;;  %v625_v28 = vand.u32 2147483647, %v593_v11  ;;  %v626_v29 = vand.u32 2147483647, %v594_v12  ;;  %v495_v37 = vmax.f32 %v463_v20, 0.0  ;;  %v496_v40 = vmax.f32 %v464_v21, 0.0 }
  0xdd   : > { %v651_v45 = vsub.f32 1.0, %v619_v41  ;;  %v652_v46 = vsub.f32 1.0, %v620_v44  ;;  %v356_v48 = vpop.permute.xlu1 %355  ;;  %v725_v12 = vld [vmem:[%s1258_s3] sm:$0xff] }
  0xde   : > { %v397_v56 = vsub.f32 %v1267_v42, %v356_v48  ;;  %v398_v57 = vsub.f32 %v1269_v43, %v356_v48 }
  0xdf   : > { %v683_v53 = vmax.f32 %v651_v45, 0.0  ;;  %v684_v54 = vmax.f32 %v652_v46, 0.0 }
  0xe0   : > { %v429_v4 = vand.u32 2147483647, %v397_v56  ;;  %v430_v5 = vand.u32 2147483647, %v398_v57 }
  0xe1   : > { %v715_v58 = vmul.f32 %v683_v53, %v491_v51  ;;  %v716_v59 = vmul.f32 %v684_v54, %v492_v52  ;;  %v465_v51 = vsub.f32 1.0, %v433_v24  ;;  %v466_v52 = vsub.f32 1.0, %v434_v25 }
  0xe2   : > { %v551_v61 = vpop.permute.xlu1 %550  ;;  %v461_v18 = vsub.f32 1.0, %v429_v4  ;;  %v462_v19 = vsub.f32 1.0, %v430_v5  ;;  %v657_v53 = vsub.f32 1.0, %v625_v28  ;;  %v658_v54 = vsub.f32 1.0, %v626_v29 }
  0xe3   : > { %v589_v63 = vsub.f32 %v1261_v38, %v551_v61  ;;  %v590_v0 = vsub.f32 %v1263_v39, %v551_v61  ;;  %v964_v1 = vpack.c.bf16 %v716_v59, %v714_v50  ;;  %v966_v2 = vpack.c.bf16 %v715_v58, %v713_v49 }
  0xe4   : > { %v493_v33 = vmax.f32 %v461_v18, 0.0  ;;  %v494_v34 = vmax.f32 %v462_v19, 0.0  ;;  %v497_v62 = vmax.f32 %v465_v51, 0.0 }
  0xe5   : > { %v621_v7 = vand.u32 2147483647, %v589_v63  ;;  %v622_v8 = vand.u32 2147483647, %v590_v0  ;;  %965 = vmatprep.subr.bf16.mxu0 %v964_v1  ;;  %v498_v63 = vmax.f32 %v466_v52, 0.0  ;;  %v689_v0 = vmax.f32 %v657_v53, 0.0 }
  0xe6   : > { %v555_v13 = vpop.permute.xlu1 %554  ;;  %967 = vmatpush1.bf16.xpose.msra.mxu0 %v966_v2  ;;  %v690_v1 = vmax.f32 %v658_v54, 0.0 }
  0xe7   : > { %v653_v14 = vsub.f32 1.0, %v621_v7  ;;  %v654_v15 = vsub.f32 1.0, %v622_v8  ;;  %v591_v16 = vsub.f32 %v1261_v38, %v555_v13  ;;  %v592_v17 = vsub.f32 %v1263_v39, %v555_v13 }
  0xe8   : > { %v721_v6 = vmul.f32 %v689_v0, %v497_v62  ;;  %v722_v7 = vmul.f32 %v690_v1, %v498_v63 }
  0xe9   : > { %v623_v22 = vand.u32 2147483647, %v591_v16  ;;  %v624_v23 = vand.u32 2147483647, %v592_v17  ;;  %v685_v26 = vmax.f32 %v653_v14, 0.0  ;;  %v686_v27 = vmax.f32 %v654_v15, 0.0 }
  0xeb   : > { %v655_v30 = vsub.f32 1.0, %v623_v22  ;;  %v656_v31 = vsub.f32 1.0, %v624_v23  ;;  %v371_v32 = vpop.permute.xlu1 %370  ;;  %v717_v45 = vmul.f32 %v685_v26, %v493_v33  ;;  %v718_v46 = vmul.f32 %v686_v27, %v494_v34 }
  0xec   : > { %v403_v35 = vsub.f32 %v1267_v42, %v371_v32  ;;  %v404_v36 = vsub.f32 %v1269_v43, %v371_v32 }
  0xed   : > { %v687_v41 = vmax.f32 %v655_v30, 0.0  ;;  %v688_v44 = vmax.f32 %v656_v31, 0.0 }
  0xee   : > { %v435_v49 = vand.u32 2147483647, %v403_v35  ;;  %v436_v50 = vand.u32 2147483647, %v404_v36 }
  0xef   : > { %v719_v47 = vmul.f32 %v687_v41, %v495_v37  ;;  %v720_v48 = vmul.f32 %v688_v44, %v496_v40 }
  0xf0   : > { %v563_v55 = vpop.permute.xlu1 %562  ;;  %v467_v58 = vsub.f32 1.0, %v435_v49  ;;  %v468_v59 = vsub.f32 1.0, %v436_v50 }
  0xf1   : > { %v595_v56 = vsub.f32 %v1261_v38, %v563_v55  ;;  %v596_v42 = vsub.f32 %v1263_v39, %v563_v55  ;;  %v968_v43 = vpack.c.bf16 %v720_v48, %v718_v46  ;;  %v970_v57 = vpack.c.bf16 %v719_v47, %v717_v45 }
  0xf2   : > { %v499_v4 = vmax.f32 %v467_v58, 0.0  ;;  %v500_v38 = vmax.f32 %v468_v59, 0.0 }
  0xf3   : > { %v627_v60 = vand.u32 2147483647, %v595_v56  ;;  %v628_v61 = vand.u32 2147483647, %v596_v42  ;;  %969 = vmatprep.subr.bf16.mxu0 %v968_v43 }
  0xf4   : > { %971 = vmatpush1.bf16.xpose.msra.mxu0 %v970_v57 }
  0xf5   : > { %v659_v2 = vsub.f32 1.0, %v627_v60  ;;  %v660_v3 = vsub.f32 1.0, %v628_v61 }
  0xf7   : > { %v691_v5 = vmax.f32 %v659_v2, 0.0  ;;  %v692_v39 = vmax.f32 %v660_v3, 0.0 }
  0xf9   : > { %v723_v8 = vmul.f32 %v691_v5, %v499_v4  ;;  %v724_v9 = vmul.f32 %v692_v39, %v500_v38 }
  0xfb   : > { %v972_v10 = vpack.c.bf16 %v724_v9, %v722_v7  ;;  %v974_v11 = vpack.c.bf16 %v723_v8, %v721_v6 }
  0xfd   : > { %973 = vmatprep.subr.bf16.mxu0 %v972_v10 }
  0xfe   : > { %975 = vmatpush1.bf16.xpose.msra.mxu0 %v974_v11 }
 0x105   : > { %793 = vmatmul.mubr.f32.vlgmr.msra.gmra.mrb[0].mxu0 %v725_v12 }
 0x1d8   : > { %v794_v13 = vpop.f32.mrb[0].mxu0 }
 0x1d9   : > { %804 = vst [vmem:[%s213_s6] sm:$0xff] %v794_v13  ;;  %v796_v14 = vpop.f32.mrb[1].mxu0 }
 0x1da   : > { %1067 = shalt.err (!%p1064_p5)
}
 0x1db   : > { %s1068_s26 = scalar_lea.hbm %s1343_s18, 128  ;;  %s1072_s29 = scalar_lea.hbm %s1390_s2, 256 }
 0x1dc   : > { %p1069_p6 = scmp.ne.s32.totalorder %s1343_s18, %s1068_s26  ;;  %p1073_p10 = scmp.lt.u32.totalorder %s1343_s18, %s1390_s2 }
 0x1dd   : > { %p1074_p11 = scmp.lt.u32.totalorder %s1072_s29, %s1068_s26  ;;  %p1076_p13 = scmp.lt.u32.totalorder %s1068_s26, %s1343_s18 }
 0x1de   : > { %p1070_p7 = pnand %p1069_p6, %p1192_p4 }
 0x1df   : > { %p1075_p12 = por %p1074_p11, %p1073_p10 }
 0x1e0   : > { %p1071_p9 = pneg %p1070_p7 }
 0x1e1   : > { %p1077_p0 = por %p1076_p13, %p1075_p12 }
 0x1e3   : > { %p1078_p1 = pnand %p1077_p0, %p1071_p9 }
 0x1e5   : > { %1081 = shalt.err (!%p1078_p1)
}
 0x1e6   : > { %976 = dma.vmem_to_hbm [thread:$0]  (%p1192_p4), %s1338_s7, 128, %s1343_s18, %s806_s20  }
 0x1e7 PF: > { %p982_p2 = scmp.ge.s32.totalorder %s1132_s14, 2  ;;  %s833_s4 = sand.u32 1, %s1112_s9  }
 0x1e8   : > { %s834_s5 = scalar_lea.sflag [#allocation4], %s833_s4 }
 0x1e9   : > { %p979_p3 = pnand %p982_p2, %p1199_p8 }
 0x1eb   : > { %1107 = dma.done.wait (!%p979_p3), %s834_s5, 128  }
 0x1ec   : > { %1109 = vsyncadd (!%p979_p3), %s834_s5, 4294967168  ;;  %s15_s14 = sadd.s32 1, %s1132_s14   ;;  %s1393_s9 = smov %s1116_s10 }
 0x1ed   : > { %p12_p5 = scmp.ge.s32.totalorder %s15_s14, 4   ;;  %s1394_s10 = smov %s1120_s11 }
 0x1ee   : > { %s1395_s11 = smov %s1205_s22  ;;  %s1396_s12 = smov %s1128_s13 }
 0x1ef   : > { %s1397_s13 = smov %s1399_s17  ;;  %14 = sbr.rel (!%p12_p5) target bundleno = 4 (0x4), region = 74 }
 0x1f6   :  { %839 = vsyncpa [#allocation4], 1 }
 0x1f7   :  { %841 = vsyncpa [#allocation4 + $0x1], 1 }

</bundles_post_ra>
